<compile_context>
chip_gen: v6e
topology: v6e:2x2x1
jax: 0.10.0
libtpu: 0.0.40
codegen_flags: <defaults>
</compile_context>

<pallas_src>
import functools

import jax
import jax.numpy as jnp
from jax import lax
from jax.experimental import pallas as pl
from jax.experimental.pallas import tpu as pltpu


# ----------------------------------------------------------------------------
# Fused weight: banded over (Wp, Cin)->(Wo, Cout), stacked over KH, block-diagonal
# over the G images packed on the lane axis.
#   row    = kh*(G*Kc) + g*Kc + wp*Cin + ci   (matches the im2col LHS lane order)
#   column = g*L + w*Cout + co                (matches the output lane order)
# ----------------------------------------------------------------------------
def _build_fused_weight(weight, Wo, G):
    Cout, Cin, KH, KW = weight.shape
    Wp = Wo + KW - 1
    Kc = Wp * Cin
    L = Wo * Cout
    wk = jnp.transpose(weight, (2, 3, 1, 0)).astype(jnp.float32)   # (KH, KW, Cin, Cout)
    kw_idx = jnp.arange(Wp)[:, None] - jnp.arange(Wo)[None, :]     # (Wp, Wo)
    valid = (kw_idx >= 0) & (kw_idx < KW)
    g = wk[:, jnp.clip(kw_idx, 0, KW - 1)]                         # (KH, Wp, Wo, Cin, Cout)
    g = jnp.where(valid[None, :, :, None, None], g, 0.0)
    band = jnp.transpose(g, (0, 1, 3, 2, 4)).reshape(KH, Kc, L)    # (KH, Kc, L)
    eye = jnp.eye(G, dtype=band.dtype)
    blk = jnp.einsum('kab,gh->kgahb', band, eye)                   # (KH, G, Kc, G, L)
    return blk.reshape(KH * G * Kc, G * L)


# ----------------------------------------------------------------------------
# Pass 1: conv (one fused matmul) + bias + ReLU; writes the lane-dense activations
# and per-grid-step BN partial sums / sums-of-squares.
# ----------------------------------------------------------------------------
def _conv_stats_kernel(x_ref, w_ref, bias_ref, y_ref, stats_ref, *, Ho, KH, GKc):
    tn = x_ref.shape[0]
    M = tn * Ho
    xi = x_ref[...]                                   # (tn, Hp, GKc)  matmul dtype
    # Fused im2col: KH shifted row-slices concatenated on the lane axis -> K = KH*GKc.
    lhs = jnp.concatenate(
        [xi[:, kh:kh + Ho, :].reshape(M, GKc) for kh in range(KH)], axis=1)
    acc = jnp.dot(lhs, w_ref[...], preferred_element_type=jnp.float32)   # (M, GL) f32
    y = jnp.maximum(acc + bias_ref[...], 0.0)                            # ReLU, f32
    y_ref[...] = y.reshape(y_ref.shape).astype(y_ref.dtype)
    stats = jnp.concatenate([jnp.sum(y, axis=0, keepdims=True),
                             jnp.sum(y * y, axis=0, keepdims=True)], axis=0)
    stats_ref[...] = stats.reshape(stats_ref.shape)


# ----------------------------------------------------------------------------
# Pass 2: pure elementwise BN apply (y * scale + shift) on the lane-dense slab.
# ----------------------------------------------------------------------------
def _bn_apply_kernel(y_ref, aff_ref, o_ref):
    aff = aff_ref[...]                                # (2, GL) f32: scale, shift
    y = y_ref[...].astype(jnp.float32)                # (tn, Ho, GL)
    o_ref[...] = (y * aff[0:1, :] + aff[1:2, :]).astype(o_ref.dtype)


# ----------------------------------------------------------------------------
# Generation-aware VMEM budget and tile-size heuristic.
# ----------------------------------------------------------------------------
def _vmem_limit_bytes():
    cap = 64 * 1024 * 1024
    try:
        cap = int(pltpu.get_tpu_info().vmem_capacity_bytes)
    except Exception:
        pass
    # ~45 MiB of v7x's 64 MiB per-TC VMEM, ~90 MiB of v5e/v6e's 128 MiB.
    return min(int(cap * 0.7), 96 * 1024 * 1024)


def _pick_tile(N_g, Hp, Ho, GKc, GL, KH, in_isz, y_isz, vmem_limit):
    per_img = (2 * Hp * GKc * in_isz          # double-buffered input block
               + 2 * Ho * GL * y_isz          # double-buffered y output block
               + Ho * KH * GKc * in_isz       # fused im2col temporary
               + 3 * Ho * GL * 4)             # f32 acc / ReLU / stats temporaries
    budget = max(vmem_limit // 2, 1 << 20)
    tn = max(1, budget // max(per_img, 1))
    tn = min(tn, max(1, 4096 // max(Ho, 1)))  # cap matmul M at ~4096 rows
    return max(1, min(tn, N_g))


# ----------------------------------------------------------------------------
# normal_net forward.
# ----------------------------------------------------------------------------
def normal_net_forward(x, weight, bias, gamma, beta, *, pooling=False,
                       matmul_dtype=jnp.bfloat16, images_per_block=None):
    """x: (N, Cin, H, W); weight: (Cout, Cin, KH, KW); bias/gamma/beta: (Cout,)."""
    x = x.astype(jnp.float32)
    if pooling:
        # F.max_pool2d(x, kernel_size=2): stride 2, floor on odd dims.
        # TODO(synk): the 2x2 max-pool stays a tiny XLA reduce in the wrapper (not fused).
        N0, C0, H0, W0 = x.shape
        x = x[:, :, :(H0 // 2) * 2, :(W0 // 2) * 2]
        x = jnp.max(x.reshape(N0, C0, H0 // 2, 2, W0 // 2, 2), axis=(3, 5))

    N, Cin, H, W = x.shape
    Cout, _, KH, KW = weight.shape
    Hp, Wp = H + 2, W + 2                     # padding = 1
    Ho, Wo = Hp - KH + 1, Wp - KW + 1
    Kc = Wp * Cin                             # per-image contraction lanes
    L = Wo * Cout                             # per-image output lanes

    # Pack G images side-by-side on the lane axis so output stores are >=128 lanes wide
    # (fixes the pooled L=64 masked-store case).
    G = max(1, (128 + L - 1) // L)
    GKc, GL = G * Kc, G * L

    vmem_limit = _vmem_limit_bytes()
    in_isz = jnp.dtype(matmul_dtype).itemsize
    y_isz = in_isz

    N_g = -(-N // G)
    if images_per_block is None:
        tn = _pick_tile(N_g, Hp, Ho, GKc, GL, KH, in_isz, y_isz, vmem_limit)
    else:
        tn = max(1, min(int(images_per_block), N_g))
    nsteps = -(-N_g // tn)
    N_g_pad = nsteps * tn
    N_pad = N_g_pad * G
    pad_imgs = N_pad - N                      # zero images appended to the batch

    # NCHW -> NHWC, zero-pad spatial + batch, fold (G, W, Cin) onto the lane axis.
    xt = jnp.transpose(x, (0, 2, 3, 1))                                 # (N, H, W, Cin)
    xt = jnp.pad(xt, ((0, pad_imgs), (1, 1), (1, 1), (0, 0)))           # (N_pad, Hp, Wp, Cin)
    x2 = xt.reshape(N_g_pad, G, Hp, Kc).transpose(0, 2, 1, 3).reshape(N_g_pad, Hp, GKc)
    x2 = x2.astype(matmul_dtype)

    Bf = _build_fused_weight(weight, Wo, G).astype(matmul_dtype)        # (KH*GKc, GL)
    bias_f32 = bias.astype(jnp.float32)
    bias_lane = jnp.tile(jnp.tile(bias_f32, Wo), G).reshape(1, GL)

    grid = (nsteps,)
    Mtot = N_g_pad * Ho
    flops1 = 2 * Mtot * (KH * GKc) * GL
    x_bytes = int(x2.size) * in_isz
    w_bytes = int(Bf.size) * in_isz
    y_bytes = Mtot * GL * y_isz

    # ---- Pass 1: conv + ReLU, lane-dense y output + per-step BN partial stats --------
    kernel1 = functools.partial(_conv_stats_kernel, Ho=Ho, KH=KH, GKc=GKc)
    y_conv, stats = pl.pallas_call(
        kernel1,
        out_shape=(jax.ShapeDtypeStruct((N_g_pad, Ho, GL), matmul_dtype),
                   jax.ShapeDtypeStruct((nsteps, 2, GL), jnp.float32)),
        grid=grid,
        in_specs=[
            pl.BlockSpec((tn, Hp, GKc), lambda i: (i, 0, 0)),
            pl.BlockSpec((KH * GKc, GL), lambda i: (0, 0)),
            pl.BlockSpec((1, GL), lambda i: (0, 0)),
        ],
        out_specs=[
            pl.BlockSpec((tn, Ho, GL), lambda i: (i, 0, 0)),
            pl.BlockSpec((1, 2, GL), lambda i: (i, 0, 0)),
        ],
        compiler_params=pltpu.CompilerParams(
            dimension_semantics=("parallel",),          # per-step slices -> both TCs
            vmem_limit_bytes=vmem_limit),
        cost_estimate=pl.CostEstimate(
            flops=flops1, transcendentals=0,
            bytes_accessed=x_bytes + w_bytes + y_bytes + nsteps * 2 * GL * 4),
    )(x2, Bf, bias_lane)

    # ---- Tiny BN math (XLA): reduce partials, undo the zero-padded images' effect ----
    st = stats.sum(axis=0).reshape(2, G, Wo, Cout).sum(axis=(1, 2))     # (2, Cout)
    relu_bias = jnp.maximum(bias_f32, 0.0)       # padded (all-zero) images produce this
    pad_corr = float(pad_imgs * Ho * Wo)
    s0 = st[0] - pad_corr * relu_bias
    s1 = st[1] - pad_corr * relu_bias * relu_bias
    cnt = float(N * Ho * Wo)
    mean = s0 / cnt
    # NOTE: E[y^2] - E[y]^2 in f32 (clamped at 0); adequate at these sizes.
    var = jnp.maximum(s1 / cnt - mean * mean, 0.0)
    inv = lax.rsqrt(var + 1e-5)
    scale_c = gamma.astype(jnp.float32) * inv
    shift_c = beta.astype(jnp.float32) - mean * scale_c
    affine = jnp.stack([jnp.tile(jnp.tile(scale_c, Wo), G),
                        jnp.tile(jnp.tile(shift_c, Wo), G)], axis=0)    # (2, GL)

    # ---- Pass 2: pure elementwise BN apply (no conv recompute), lane-dense stores ----
    # TODO(synk): input_output_aliases could update y_conv in place when dtypes match.
    out_lane = pl.pallas_call(
        _bn_apply_kernel,
        out_shape=jax.ShapeDtypeStruct((N_g_pad, Ho, GL), jnp.float32),
        grid=grid,
        in_specs=[
            pl.BlockSpec((tn, Ho, GL), lambda i: (i, 0, 0)),
            pl.BlockSpec((2, GL), lambda i: (0, 0)),
        ],
        out_specs=pl.BlockSpec((tn, Ho, GL), lambda i: (i, 0, 0)),
        compiler_params=pltpu.CompilerParams(
            dimension_semantics=("parallel",),
            vmem_limit_bytes=vmem_limit),
        cost_estimate=pl.CostEstimate(
            flops=2 * Mtot * GL, transcendentals=0,
            bytes_accessed=y_bytes + Mtot * GL * 4),
    )(y_conv, affine)

    # Unpack lanes -> NCHW, drop the batch padding.
    y = out_lane.reshape(N_g_pad, Ho, G, Wo, Cout)
    y = jnp.transpose(y, (0, 2, 1, 3, 4)).reshape(N_pad, Ho, Wo, Cout)[:N]
    return jnp.transpose(y, (0, 3, 1, 2))


# ----------------------------------------------------------------------------
# Pure-JAX reference (correctness check only).
# ----------------------------------------------------------------------------
def normal_net_reference(x, weight, bias, gamma, beta, *, pooling=False):
    x = x.astype(jnp.float32)
    if pooling:
        N, C, H, W = x.shape
        x = x[:, :, :(H // 2) * 2, :(W // 2) * 2]
        x = jnp.max(x.reshape(N, C, H // 2, 2, W // 2, 2), axis=(3, 5))
    y = lax.conv_general_dilated(
        x, weight.astype(jnp.float32),
        window_strides=(1, 1), padding=((1, 1), (1, 1)),
        dimension_numbers=("NCHW", "OIHW", "NCHW"),
    ) + bias.reshape(1, -1, 1, 1)
    y = jnp.maximum(y, 0.0)
    m = jnp.mean(y, axis=(0, 2, 3), keepdims=True)
    v = jnp.mean((y - m) ** 2, axis=(0, 2, 3), keepdims=True)
    y = (y - m) * lax.rsqrt(v + 1e-5)
    return y * gamma.reshape(1, -1, 1, 1) + beta.reshape(1, -1, 1, 1)


if __name__ == "__main__":
    # Shapes consistent with the module: batch=2, Cin=4, Cout=8, 16x16, k=3.
    N, Cin, Cout, H, W, K = 2, 4, 8, 16, 16, 3

    key = jax.random.PRNGKey(0)
    kx, kw, kb, kg, kbeta, kx5 = jax.random.split(key, 6)

    x = jax.random.normal(kx, (N, Cin, H, W), dtype=jnp.float32)
    weight = 0.1 * jax.random.normal(kw, (Cout, Cin, K, K), dtype=jnp.float32)
    bias = 0.1 * jax.random.normal(kb, (Cout,), dtype=jnp.float32)
    gamma = 1.0 + 0.1 * jax.random.normal(kg, (Cout,), dtype=jnp.float32)
    beta = 0.1 * jax.random.normal(kbeta, (Cout,), dtype=jnp.float32)

    ok = True
    for pooling in (False, True):
        ref = jax.block_until_ready(
            normal_net_reference(x, weight, bias, gamma, beta, pooling=pooling))

        # f32 matmul path (tight tolerance); images_per_block=1 forces a multi-step
        # grid (for pooling=False) so pipelining + partial-stats reduction is exercised.
        out = jax.block_until_ready(
            normal_net_forward(x, weight, bias, gamma, beta, pooling=pooling,
                               matmul_dtype=jnp.float32, images_per_block=1))
        ok &= out.shape == ref.shape
        ok &= bool(jnp.allclose(out, ref, rtol=1e-4, atol=1e-4))

        # bf16 matmul path (MXU-native), heuristic tile size, looser tolerance.
        out_bf16 = jax.block_until_ready(
            normal_net_forward(x, weight, bias, gamma, beta, pooling=pooling,
                               matmul_dtype=jnp.bfloat16))
        ok &= out_bf16.shape == ref.shape
        ok &= bool(jnp.allclose(out_bf16, ref, rtol=5e-2, atol=5e-2))

    # Ragged batch (N=5) + pooling: exercises lane packing (G=2), batch zero-padding,
    # the padded-image statistics correction and a 2-step "parallel" grid.
    x5 = jax.random.normal(kx5, (5, Cin, H, W), dtype=jnp.float32)
    ref5 = jax.block_until_ready(
        normal_net_reference(x5, weight, bias, gamma, beta, pooling=True))
    out5 = jax.block_until_ready(
        normal_net_forward(x5, weight, bias, gamma, beta, pooling=True,
                           matmul_dtype=jnp.float32, images_per_block=2))
    ok &= out5.shape == ref5.shape
    ok &= bool(jnp.allclose(out5, ref5, rtol=1e-4, atol=1e-4))

    if ok:
        print("KERNEL_OK")
</pallas_src>

<mosaic_0001>
module attributes {stable_mosaic.version = 11 : i64} {
  func.func @_conv_stats_kernel(%arg0: i32, %arg1: memref<1x18x72xf32, #tpu.memory_space<vmem>>, %arg2: memref<216x128xf32, #tpu.memory_space<vmem>>, %arg3: memref<1x128xf32, #tpu.memory_space<vmem>>, %arg4: memref<1x16x128xf32, #tpu.memory_space<vmem>>, %arg5: memref<1x2x128xf32, #tpu.memory_space<vmem>>) attributes {dimension_semantics = [#tpu.dimension_semantics<parallel>], iteration_bounds = array<i64: 2>, scalar_prefetch = 0 : i64, scratch_operands = 0 : i64, tpu.core_type = #tpu.core_type<tc>, window_params = [{transform_indices = @transform_0, window_bounds = array<i64: 1, 18, 72>}, {pipeline_mode = #tpu.pipeline_mode<synchronous>, transform_indices = @transform_1, window_bounds = array<i64: 216, 128>}, {pipeline_mode = #tpu.pipeline_mode<synchronous>, transform_indices = @transform_2, window_bounds = array<i64: 1, 128>}, {transform_indices = @transform_3, window_bounds = array<i64: 1, 16, 128>}, {transform_indices = @transform_4, window_bounds = array<i64: 1, 2, 128>}]} {
    %c0 = arith.constant 0 : index
    %c0_0 = arith.constant 0 : index
    %c0_1 = arith.constant 0 : index
    %0 = vector.load %arg1[%c0, %c0_0, %c0_1] : memref<1x18x72xf32, #tpu.memory_space<vmem>>, vector<1x18x72xf32>
    %1 = vector.extract_strided_slice %0 {offsets = [0, 0, 0], sizes = [1, 16, 72], strides = [1, 1, 1]} : vector<1x18x72xf32> to vector<1x16x72xf32>
    %2 = vector.shape_cast %1 : vector<1x16x72xf32> to vector<16x72xf32>
    %3 = vector.extract_strided_slice %0 {offsets = [0, 1, 0], sizes = [1, 16, 72], strides = [1, 1, 1]} : vector<1x18x72xf32> to vector<1x16x72xf32>
    %4 = vector.shape_cast %3 : vector<1x16x72xf32> to vector<16x72xf32>
    %5 = vector.extract_strided_slice %0 {offsets = [0, 2, 0], sizes = [1, 16, 72], strides = [1, 1, 1]} : vector<1x18x72xf32> to vector<1x16x72xf32>
    %6 = vector.shape_cast %5 : vector<1x16x72xf32> to vector<16x72xf32>
    %7 = tpu.concatenate %2, %4, %6 in 1 : vector<16x72xf32>, vector<16x72xf32>, vector<16x72xf32> -> vector<16x216xf32>
    %c0_2 = arith.constant 0 : index
    %c0_3 = arith.constant 0 : index
    %8 = vector.load %arg2[%c0_2, %c0_3] : memref<216x128xf32, #tpu.memory_space<vmem>>, vector<216x128xf32>
    %cst = arith.constant dense<0.000000e+00> : vector<16x128xf32>
    %9 = tpu.matmul %7, %8, %cst {dimension_numbers = #tpu.dot_dimension_numbers<[1], [0], [0], [1], [0, 0, 1, 1], [], []>} : vector<16x216xf32>, vector<216x128xf32>, vector<16x128xf32> -> vector<16x128xf32>
    %c0_4 = arith.constant 0 : index
    %c0_5 = arith.constant 0 : index
    %10 = vector.load %arg3[%c0_4, %c0_5] : memref<1x128xf32, #tpu.memory_space<vmem>>, vector<1x128xf32>
    %11 = vector.broadcast %10 : vector<1x128xf32> to vector<16x128xf32>
    %12 = arith.addf %9, %11 : vector<16x128xf32>
    %cst_6 = arith.constant 0.000000e+00 : f32
    %13 = vector.broadcast %cst_6 : f32 to vector<16x128xf32>
    %14 = arith.maximumf %12, %13 : vector<16x128xf32>
    %15 = vector.shape_cast %14 : vector<16x128xf32> to vector<1x16x128xf32>
    %c0_7 = arith.constant 0 : index
    %c0_8 = arith.constant 0 : index
    %c0_9 = arith.constant 0 : index
    %16 = vector.load %arg4[%c0_7, %c0_8, %c0_9] : memref<1x16x128xf32, #tpu.memory_space<vmem>>, vector<1x16x128xf32>
    tpu.vector_store %arg4[%c0_7, %c0_8, %c0_9], %15 {strides = array<i32>} : memref<1x16x128xf32, #tpu.memory_space<vmem>>, vector<1x16x128xf32>,
    %cst_10 = arith.constant dense<0.000000e+00> : vector<128xf32>
    %17 = vector.multi_reduction <add>, %14, %cst_10 [0] : vector<16x128xf32> to vector<128xf32>
    %18 = vector.shape_cast %17 : vector<128xf32> to vector<1x128xf32>
    %19 = arith.mulf %14, %14 : vector<16x128xf32>
    %cst_11 = arith.constant dense<0.000000e+00> : vector<128xf32>
    %20 = vector.multi_reduction <add>, %19, %cst_11 [0] : vector<16x128xf32> to vector<128xf32>
    %21 = vector.shape_cast %20 : vector<128xf32> to vector<1x128xf32>
    %22 = tpu.concatenate %18, %21 in 0 : vector<1x128xf32>, vector<1x128xf32> -> vector<2x128xf32>
    %23 = vector.shape_cast %22 : vector<2x128xf32> to vector<1x2x128xf32>
    %c0_12 = arith.constant 0 : index
    %c0_13 = arith.constant 0 : index
    %c0_14 = arith.constant 0 : index
    %24 = vector.load %arg5[%c0_12, %c0_13, %c0_14] : memref<1x2x128xf32, #tpu.memory_space<vmem>>, vector<1x2x128xf32>
    tpu.vector_store %arg5[%c0_12, %c0_13, %c0_14], %23 {strides = array<i32>} : memref<1x2x128xf32, #tpu.memory_space<vmem>>, vector<1x2x128xf32>,
    return
  }
  func.func @transform_0(%arg0: i32) -> (i32, i32, i32) {
    %c0_i32 = arith.constant 0 : i32
    %c0_i32_0 = arith.constant 0 : i32
    %c0_i32_1 = arith.constant 0 : i32
    return %arg0, %c0_i32, %c0_i32_0 : i32, i32, i32
  }
  func.func @transform_1(%arg0: i32) -> (i32, i32) {
    %c0_i32 = arith.constant 0 : i32
    %c0_i32_0 = arith.constant 0 : i32
    %c0_i32_1 = arith.constant 0 : i32
    return %c0_i32, %c0_i32_0 : i32, i32
  }
  func.func @transform_2(%arg0: i32) -> (i32, i32) {
    %c0_i32 = arith.constant 0 : i32
    %c0_i32_0 = arith.constant 0 : i32
    %c0_i32_1 = arith.constant 0 : i32
    return %c0_i32, %c0_i32_0 : i32, i32
  }
  func.func @transform_3(%arg0: i32) -> (i32, i32, i32) {
    %c0_i32 = arith.constant 0 : i32
    %c0_i32_0 = arith.constant 0 : i32
    %c0_i32_1 = arith.constant 0 : i32
    return %arg0, %c0_i32, %c0_i32_0 : i32, i32, i32
  }
  func.func @transform_4(%arg0: i32) -> (i32, i32, i32) {
    %c0_i32 = arith.constant 0 : i32
    %c0_i32_0 = arith.constant 0 : i32
    %c0_i32_1 = arith.constant 0 : i32
    return %arg0, %c0_i32, %c0_i32_0 : i32, i32, i32
  }
}

</mosaic_0001>

<bundles_post_ra>
// kernel: tpu_custom_call.1
= control target key start
LH: loop header
LB: loop body
LE: loop exit
PB: predicated region body
PF: predicated region fallthrough
CT: control target
= control target key end

     0   :  { %10 = vsyncpa [#allocation3], 0  ;;  %s1047_s0 = inlined_call_operand.vmem [shape: f32[2,18,72], index: 0, kind: input, shape index: {}]   ;;  %s1048_s1 = inlined_call_operand.hbm [shape: f32[216,128], index: 1, kind: input, shape index: {}]   ;;  %s1049_s2 = inlined_call_operand.vmem [shape: f32[1,128], index: 2, kind: input, shape index: {}]   ;;  %s1050_s3 = inlined_call_operand.hbm [shape: f32[2,16,128], index: 3, kind: output, shape index: {0}]   ;;  %s1051_s4 = inlined_call_operand.hbm [shape: f32[2,2,128], index: 4, kind: output, shape index: {1}]  }
   0x1   :  { %11 = vsyncpa [#allocation4], 0 }
   0x2   :  { %13 = vsyncpa [#allocation4 + $0x1], 0 }
   0x3   :  { %14 = vsyncpa [#allocation7], 0 }
   0x4   :  { %16 = vsyncpa [#allocation7 + $0x1], 0  ;;  %s829_s15 = smov 0   ;;  %s831_s16 = smov 0  }
   0x5   :  { %s833_s17 = smov 0   ;;  %s835_s18 = smov 0  }
   0x6 LB: > { %s850_s19 = sadd.s32 4294967295, %s792_s18   ;;  %s535_s20 = sadd.s32 4294967294, %s792_s18   ;;  %s792_s18 = sphi %s835_s18, %s1059_s18   ;;  %s788_s17 = sphi %s833_s17, %s1058_s17   ;;  %s784_s16 = sphi %s831_s16, %s1057_s16   ;;  %s780_s15 = sphi %s829_s15, %s1056_s15  }
   0x7   : > { %s854_s21 = sadd.s32 1, %s792_s18   ;;  %s97_s22 = sadd.s32 1, %s788_s17 }
   0x8   : > { %s94_s23 = ssub.s32 %s792_s18, %s854_s21  ;;  %p107_p0 = scmp.ne.s32.totalorder %s788_s17, %s784_s16 }
   0x9   : > { %p95_p1 = scmp.eq.s32.totalorder %s94_s23, 0  ;;  %p108_p2 = scmp.eq.s32.totalorder %s850_s19, 1 }
   0xa   : > { %p113_p3 = scmp.ne.s32.totalorder %s784_s16, %s780_s15  ;;  %p114_p4 = scmp.eq.s32.totalorder %s535_s20, 1 }
   0xb   : > { %s865_s24 = scalar_select %p95_p1, %s788_s17, %s97_s22  }
   0xc   : > { %p867_p5 = por %p108_p2, %p107_p0  ;;  %p871_p6 = por %p114_p4, %p113_p3 }
   0xd   : > { %p536_p7 = scmp.ge.s32.totalorder %s792_s18, 1  ;;  %p147_p8 = scmp.lt.s32.totalorder %s792_s18, 3 }
   0xe   : > { %s1053_s26 = scalar_select %p871_p6, 1, 0 }
   0xf   : > { %p629_p9 = scmp.eq.s32.totalorder %s850_s19, 0  ;;  %p878_p10 = pnand %p536_p7, %p147_p8 }
  0x10   : > { %s794_s28 = smov [#allocation2]  }
  0x11   : > { %s159_s29 = sshll.u32 %s794_s28, 4  ;;  %p618_p11 = pneg %p878_p10  ;;  %s160_s29 = int_to_ptr.vmem [resolvable:$true] %s159_s29 }
  0x12   : > { %s683_s30 = scalar_lea.vmem %s160_s29, 3456  ;;  %p691_p3 = scmp.lt.s32.totalorder %s160_s29, %s160_s29 }
  0x13   : > { %p619_p12 = pnand %p629_p9, %p618_p11  ;;  %p684_p0 = scmp.ne.s32.totalorder %s160_s29, %s683_s30 }
  0x14   : > { %p692_p4 = scmp.lt.s32.totalorder %s683_s30, %s683_s30 }
  0x15   : > { %p674_p13 = pneg %p619_p12 }
  0x16   : > { %p693_p6 = por %p692_p4, %p691_p3 }
  0x17   : > { %p686_p1 = pnand %p684_p0, %p674_p13 }
  0x19   : > { %p687_p2 = pneg %p686_p1 }
  0x1b   : > { %p694_p7 = pnand %p693_p6, %p687_p2 }
  0x1d   : > { %697 = shalt.err (!%p694_p7)
}
  0x1e   : > { %s795_s5 = smov 128   ;;  %s796_s6 = smov 8  }
  0x1f   : > { %621 = dma.hbm_to_vmem [thread:$0]  (!%p619_p12), %s1048_s1, 3456, %s160_s29, [#allocation3], %s795_s5, %s795_s5, %s796_s6  }
  0x20   : > { %186 = sbr.rel (%p878_p10) target bundleno = 407 (0x197), region = 32 }
  0x25   : > { %767 = dma.done.wait (%p629_p9), [#allocation3], 3456  }
  0x26   : > { %769 = vsyncadd (%p629_p9), [#allocation3], 4294963840  ;;  %p217_p8 = scmp.lt.s32.totalorder %s850_s19, 1  ;;  %v797_v0 = vmov 0.0   ;;  %vm240_vm0 = vcmask 1045504   ;;  %vm228_vm1 = vcmask 1046528  }
  0x27   : > { %299 = vmatprep.subr.mxu0 %v797_v0  ;;  %555 = vmatprep.subr.mxu1 %v797_v0  ;;  %v273_v8 = vld [vmem:[#allocation2 + $0x78] sm:$0xff]  ;;  %v272_v11 = vld [vmem:[#allocation2 + $0x70] sm:$0xff]  ;;  %s798_s14 = smov 16   ;;  %s799_s20 = smov 72   ;;  %v271_v14 = vld [vmem:[#allocation2 + $0x68] sm:$0xff]  ;;  %vm255_vm2 = vcmask 130048  }
  0x28   : > { %s218_s9 = scalar_select %p217_p8, %s850_s19, 1  ;;  %300 = vmatpush1.msra.mxu0 %v273_v8  ;;  %582 = vmatpush1.msra.mxu1 %v273_v8  ;;  %v270_v17 = vld [vmem:[#allocation2 + $0x60] sm:$0xff]  ;;  %v269_v18 = vld [vmem:[#allocation2 + $0x58] sm:$0xff]  ;;  %v268_v19 = vld [vmem:[#allocation2 + $0x50] sm:$0xff]  ;;  %vm252_vm3 = vcmask 588800   ;;  %vm292_vm4 = vcmask 719872  }
  0x29   : > { %301 = vmatprep.subr.mxu0 %v797_v0  ;;  %556 = vmatprep.subr.mxu1 %v797_v0  ;;  %v267_v20 = vld [vmem:[#allocation2 + $0x48] sm:$0xff]  ;;  %v266_v21 = vld [vmem:[#allocation2 + $0x40] sm:$0xff]  ;;  %v265_v22 = vld [vmem:[#allocation2 + $0x38] sm:$0xff]  ;;  %s969_s22 = sand.u32 1, %s784_s16   ;;  %s554_s5 = sshll.u32 %s850_s19, 8 }
  0x2a   : > { %s609_s10 = smul.u32 24, %s218_s9  ;;  %302 = vmatpush1.msra.mxu0 %v272_v11  ;;  %583 = vmatpush1.msra.mxu1 %v272_v11  ;;  %v264_v23 = vld [vmem:[#allocation2 + $0x30] sm:$0xff]  ;;  %v263_v24 = vld [vmem:[#allocation2 + $0x28] sm:$0xff]  ;;  %v262_v25 = vld [vmem:[#allocation2 + $0x20] sm:$0xff]  ;;  %s541_s23 = sshll.u32 %s969_s22, 4 }
  0x2b   : > { %303 = vmatprep.subr.mxu0 %v797_v0  ;;  %557 = vmatprep.subr.mxu1 %v797_v0  ;;  %v261_v26 = vld [vmem:[#allocation2 + $0x18] sm:$0xff]  ;;  %v260_v27 = vld [vmem:[#allocation2 + $0x10] sm:$0xff]  ;;  %v259_v28 = vld [vmem:[#allocation2 + $0x8] sm:$0xff]  ;;  %s209_s29 = scalar_lea.vmem [#allocation5], %s541_s23  ;;  %s981_s8 = scalar_lea.hbm %s1050_s3, %s554_s5 }
  0x2c   : > { %s221_s13 = scalar_lea.vmem %s1047_s0, %s609_s10  ;;  %304 = vmatpush1.msra.mxu0 %v271_v14  ;;  %584 = vmatpush1.msra.mxu1 %v271_v14  ;;  %v258_v29 = vld [vmem:[#allocation2] sm:$0xff]  ;;  %v284_v30 = vld [vmem:[#allocation2 + $0xd0] sm:$0xff]  ;;  %v283_v31 = vld [vmem:[#allocation2 + $0xc8] sm:$0xff]  ;;  %s416_s30 = sshll.u32 %s209_s29, 4  ;;  %s976_s30 = int_to_ptr.vmem [resolvable:$true] %s416_s30 }
  0x2d   : > { %v902_v1 = vld [vmem:[%s221_s13] sm:$0xff]  ;;  %v904_v2 = vld [vmem:[%s221_s13 + $0x8] sm:$0xff]  ;;  %v224_v3 = vld [vmem:[%s221_s13 + $0x10] sm:$0x3]  ;;  %305 = vmatprep.subr.mxu0 %v797_v0  ;;  %558 = vmatprep.subr.mxu1 %v797_v0  ;;  %s398_s9 = scalar_lea.sflag [#allocation4], %s969_s22  ;;  %s698_s10 = scalar_lea.vmem %s976_s30, 256 }
  0x2e   : > { %v241_v4 = vrot.slane %v902_v1, 2  ;;  %v242_v5 = vrot.slane %v904_v2, 2  ;;  %v229_v6 = vrot.slane %v902_v1, 1  ;;  %v230_v7 = vrot.slane %v904_v2, 1  ;;  %306 = vmatpush1.msra.mxu0 %v270_v17  ;;  %585 = vmatpush1.msra.mxu1 %v270_v17  ;;  %v282_v32 = vld [vmem:[#allocation2 + $0xc0] sm:$0xff]  ;;  %v281_v33 = vld [vmem:[#allocation2 + $0xb8] sm:$0xff]  ;;  %p699_p6 = scmp.ne.s32.totalorder %s976_s30, %s698_s10 }
  0x2f   : > { %v244_v9 = vrot.slane %v224_v3, 2  ;;  %v232_v10 = vrot.slane %v224_v3, 1  ;;  %307 = vmatprep.subr.mxu0 %v797_v0  ;;  %559 = vmatprep.subr.mxu1 %v797_v0  ;;  %v280_v34 = vld [vmem:[#allocation2 + $0xb0] sm:$0xff]  ;;  %v279_v35 = vld [vmem:[#allocation2 + $0xa8] sm:$0xff]  ;;  %v278_v36 = vld [vmem:[#allocation2 + $0xa0] sm:$0xff]  ;;  %s800_s11 = smov [#allocation5]  }
  0x30   : > { %v243_v12 = vsel %vm240_vm0, %v241_v4, %v242_v5  ;;  %v231_v13 = vsel %vm228_vm1, %v229_v6, %v230_v7  ;;  %308 = vmatpush1.msra.mxu0 %v269_v18  ;;  %586 = vmatpush1.msra.mxu1 %v269_v18  ;;  %v277_v37 = vld [vmem:[#allocation2 + $0x98] sm:$0xff]  ;;  %v276_v38 = vld [vmem:[#allocation2 + $0x90] sm:$0xff]  ;;  %v275_v39 = vld [vmem:[#allocation2 + $0x88] sm:$0xff]  ;;  %p700_p9 = pnand %p699_p6, %p867_p5  ;;  %s702_s12 = sshll.u32 %s800_s11, 4  ;;  %s703_s12 = int_to_ptr.vmem [resolvable:$false] %s702_s12 }
  0x31   : > { %246 = vrot.lane.b32.xlu1 %v243_v12, %s798_s14  ;;  %234 = vrot.lane.b32.xlu0 %v231_v13, %s799_s20  ;;  %v245_v15 = vsel %vm240_vm0, %v242_v5, %v244_v9  ;;  %v233_v16 = vsel %vm228_vm1, %v230_v7, %v232_v10  ;;  %v274_v40 = vld [vmem:[#allocation2 + $0x80] sm:$0xff]  ;;  %s704_s13 = scalar_lea.vmem %s703_s12, 512  ;;  %p705_p11 = scmp.lt.s32.totalorder %s976_s30, %s703_s12 }
  0x32   : > { %309 = vmatprep.subr.mxu0 %v797_v0  ;;  %560 = vmatprep.subr.mxu1 %v797_v0  ;;  %v544_v49 = vld [vmem:[%s1049_s2] ss:$0 sm:$0xff]  ;;  %p701_p10 = pneg %p700_p9  ;;  %p706_p12 = scmp.lt.s32.totalorder %s704_s13, %s698_s10 }
  0x33   : > { %310 = vmatpush1.msra.mxu0 %v268_v19  ;;  %587 = vmatpush1.msra.mxu1 %v268_v19 }
  0x34   : > { %311 = vmatprep.subr.mxu0 %v797_v0  ;;  %561 = vmatprep.subr.mxu1 %v797_v0  ;;  %p707_p13 = por %p706_p12, %p705_p11 }
  0x35   : > { %248 = vrot.lane.b32.xlu1 %v245_v15, %s798_s14  ;;  %236 = vrot.lane.b32.xlu0 %v233_v16, %s799_s20 }
  0x36   : > { %312 = vmatpush1.msra.mxu0 %v267_v20  ;;  %588 = vmatpush1.msra.mxu1 %v267_v20  ;;  %p708_p0 = pnand %p707_p13, %p701_p10 }
  0x37   : > { %313 = vmatprep.subr.mxu0 %v797_v0  ;;  %562 = vmatprep.subr.mxu1 %v797_v0 }
  0x38   : > { %314 = vmatpush1.msra.mxu0 %v266_v21  ;;  %589 = vmatpush1.msra.mxu1 %v266_v21 }
  0x39   : > { %315 = vmatprep.subr.mxu0 %v797_v0  ;;  %563 = vmatprep.subr.mxu1 %v797_v0 }
  0x3a   : > { %316 = vmatpush1.msra.mxu0 %v265_v22  ;;  %590 = vmatpush1.msra.mxu1 %v265_v22 }
  0x3b   : > { %317 = vmatprep.subr.mxu0 %v797_v0  ;;  %564 = vmatprep.subr.mxu1 %v797_v0 }
  0x3c   : > { %318 = vmatpush1.msra.mxu0 %v264_v23  ;;  %591 = vmatpush1.msra.mxu1 %v264_v23 }
  0x3d   : > { %319 = vmatprep.subr.mxu0 %v797_v0  ;;  %565 = vmatprep.subr.mxu1 %v797_v0 }
  0x3e   : > { %320 = vmatpush1.msra.mxu0 %v263_v24  ;;  %592 = vmatpush1.msra.mxu1 %v263_v24 }
  0x3f   : > { %321 = vmatprep.subr.mxu0 %v797_v0  ;;  %566 = vmatprep.subr.mxu1 %v797_v0 }
  0x40   : > { %322 = vmatpush1.msra.mxu0 %v262_v25  ;;  %593 = vmatpush1.msra.mxu1 %v262_v25 }
  0x41   : > { %323 = vmatprep.subr.mxu0 %v797_v0  ;;  %567 = vmatprep.subr.mxu1 %v797_v0 }
  0x42   : > { %324 = vmatpush1.msra.mxu0 %v261_v26  ;;  %594 = vmatpush1.msra.mxu1 %v261_v26 }
  0x43   : > { %325 = vmatprep.subr.mxu0 %v797_v0  ;;  %568 = vmatprep.subr.mxu1 %v797_v0 }
  0x44   : > { %326 = vmatpush1.msra.mxu0 %v260_v27  ;;  %595 = vmatpush1.msra.mxu1 %v260_v27 }
  0x45   : > { %327 = vmatprep.subr.mxu0 %v797_v0  ;;  %569 = vmatprep.subr.mxu1 %v797_v0 }
  0x46   : > { %328 = vmatpush1.msra.mxu0 %v259_v28  ;;  %596 = vmatpush1.msra.mxu1 %v259_v28 }
  0x47   : > { %329 = vmatprep.subr.mxu0 %v797_v0  ;;  %570 = vmatprep.subr.mxu1 %v797_v0 }
  0x48   : > { %330 = vmatpush1.msra.mxu0 %v258_v29  ;;  %597 = vmatpush1.msra.mxu1 %v258_v29 }
  0x49   : > { %341 = vmatprep.subr.mxu0 %v797_v0  ;;  %571 = vmatprep.subr.mxu1 %v797_v0 }
  0x4a   : > { %342 = vmatpush2.msra.mxu0 %v284_v30  ;;  %598 = vmatpush2.msra.mxu1 %v284_v30 }
  0x4b   : > { %343 = vmatprep.subr.mxu0 %v797_v0  ;;  %572 = vmatprep.subr.mxu1 %v797_v0 }
  0x4c   : > { %344 = vmatpush2.msra.mxu0 %v283_v31  ;;  %599 = vmatpush2.msra.mxu1 %v283_v31 }
  0x4d   : > { %345 = vmatprep.subr.mxu0 %v797_v0  ;;  %573 = vmatprep.subr.mxu1 %v797_v0 }
  0x4e   : > { %346 = vmatpush2.msra.mxu0 %v282_v32  ;;  %600 = vmatpush2.msra.mxu1 %v282_v32 }
  0x4f   : > { %347 = vmatprep.subr.mxu0 %v797_v0  ;;  %574 = vmatprep.subr.mxu1 %v797_v0 }
  0x50   : > { %348 = vmatpush2.msra.mxu0 %v281_v33  ;;  %601 = vmatpush2.msra.mxu1 %v281_v33 }
  0x51   : > { %349 = vmatprep.subr.mxu0 %v797_v0  ;;  %575 = vmatprep.subr.mxu1 %v797_v0 }
  0x52   : > { %350 = vmatpush2.msra.mxu0 %v280_v34  ;;  %602 = vmatpush2.msra.mxu1 %v280_v34 }
  0x53   : > { %351 = vmatprep.subr.mxu0 %v797_v0  ;;  %576 = vmatprep.subr.mxu1 %v797_v0 }
  0x54   : > { %352 = vmatpush2.msra.mxu0 %v279_v35  ;;  %603 = vmatpush2.msra.mxu1 %v279_v35 }
  0x55   : > { %353 = vmatprep.subr.mxu0 %v797_v0  ;;  %577 = vmatprep.subr.mxu1 %v797_v0 }
  0x56   : > { %354 = vmatpush2.msra.mxu0 %v278_v36  ;;  %604 = vmatpush2.msra.mxu1 %v278_v36 }
  0x57   : > { %355 = vmatprep.subr.mxu0 %v797_v0  ;;  %578 = vmatprep.subr.mxu1 %v797_v0 }
  0x58   : > { %356 = vmatpush2.msra.mxu0 %v277_v37  ;;  %605 = vmatpush2.msra.mxu1 %v277_v37 }
  0x59   : > { %357 = vmatprep.subr.mxu0 %v797_v0  ;;  %579 = vmatprep.subr.mxu1 %v797_v0 }
  0x5a   : > { %358 = vmatpush2.msra.mxu0 %v276_v38  ;;  %606 = vmatpush2.msra.mxu1 %v276_v38 }
  0x5b   : > { %359 = vmatprep.subr.mxu0 %v797_v0  ;;  %580 = vmatprep.subr.mxu1 %v797_v0 }
  0x5c   : > { %360 = vmatpush2.msra.mxu0 %v275_v39  ;;  %607 = vmatpush2.msra.mxu1 %v275_v39 }
  0x5d   : > { %361 = vmatprep.subr.mxu0 %v797_v0  ;;  %581 = vmatprep.subr.mxu1 %v797_v0 }
  0x5e   : > { %362 = vmatpush2.msra.mxu0 %v274_v40  ;;  %608 = vmatpush2.msra.mxu1 %v274_v40 }
  0xa3   : > { %v247_v41 = vpop.permute.xlu1 %246  ;;  %v235_v42 = vpop.permute.xlu0 %234 }
  0xa4   : > { %v256_v43 = vsel %vm255_vm2, %v235_v42, %v247_v41  ;;  %v253_v44 = vsel %vm252_vm3, %v902_v1, %v235_v42 }
  0xa5   : > { %545 = vmatprep.mubr.msk.f32.mxu0 %vm292_vm4, %v256_v43 }
  0xa6   : > { %364 = vmatmul.mubr.f32.vlgmr.msra.gmra.mxu0 %v253_v44 }
  0xa7   : > { %v249_v45 = vpop.permute.xlu1 %248  ;;  %v237_v46 = vpop.permute.xlu0 %236 }
  0xa8   : > { %v257_v47 = vsel %vm255_vm2, %v237_v46, %v249_v45  ;;  %v254_v48 = vsel %vm252_vm3, %v904_v2, %v237_v46 }
  0xa9   : > { %546 = vmatprep.mubr.msk.f32.mxu1 %vm292_vm4, %v257_v47 }
  0xaa   : > { %369 = vmatmul.mubr.f32.vlgmr.msra.gmra.mxu1 %v254_v48 }
 0x166   : > { %v365_v50 = vpop.f32.mrf.mxu0 }
 0x167   : > { %v366_v51 = vadd.f32 %v544_v49, %v365_v50 }
 0x168   : > { %v367_v52 = vpop.f32.mrf.mxu0 }
 0x169   : > { %v374_v53 = vmax.f32 %v366_v51, 0.0 }
 0x16a   : > { %v370_v54 = vpop.f32.mrf.mxu1 }
 0x16b   : > { %376 = vst [vmem:[%s209_s29] sm:$0xff] %v374_v53  ;;  %v371_v55 = vadd.f32 %v544_v49, %v370_v54  ;;  %v385_v58 = vmul.f32 %v374_v53, %v374_v53 }
 0x16c   : > { %v372_v56 = vpop.f32.mrf.mxu1 }
 0x16d   : > { %v375_v57 = vmax.f32 %v371_v55, 0.0 }
 0x16f   : > { %377 = vst [vmem:[%s209_s29 + $0x8] sm:$0xff] %v375_v57  ;;  %v378_v59 = vadd.f32 %v375_v57, %v374_v53  ;;  %v386_v60 = vmul.f32 %v375_v57, %v375_v57 }
 0x170   : > { %711 = shalt.err (!%p708_p0)
}
 0x171   : > { %s712_s14 = scalar_lea.hbm %s981_s8, 256  ;;  %s716_s27 = scalar_lea.hbm %s1050_s3, 512 }
 0x172   : > { %p713_p1 = scmp.ne.s32.totalorder %s981_s8, %s712_s14  ;;  %p717_p4 = scmp.lt.s32.totalorder %s981_s8, %s1050_s3 }
 0x173   : > { %p718_p7 = scmp.lt.s32.totalorder %s716_s27, %s712_s14 }
 0x174   : > { %p714_p2 = pnand %p713_p1, %p867_p5 }
 0x175   : > { %p719_p8 = por %p718_p7, %p717_p4 }
 0x176   : > { %p715_p3 = pneg %p714_p2 }
 0x178   : > { %p720_p6 = pnand %p719_p8, %p715_p3 }
 0x17a   : > { %723 = shalt.err (!%p720_p6)
}
 0x17b   : > { %s801_s5 = smov 128   ;;  %s802_s6 = smov 8   ;;  %v379_v61 = vrot.slane %v378_v59, 4  ;;  %v387_v62 = vadd.f32 %v386_v60, %v385_v58  ;;  %vm394_vm5 = vcmask 1040384  }
 0x17c   : > { %614 = dma.vmem_to_hbm [thread:$0]  (%p867_p5), %s976_s30, 256, %s981_s8, %s398_s9, %s801_s5, %s801_s5, %s802_s6  }
 0x17d   : > { %v380_v63 = vadd.f32 %v379_v61, %v378_v59  ;;  %v388_v0 = vrot.slane %v387_v62, 4  ;;  %s542_s7 = sshll.u32 %s969_s22, 1  ;;  %s551_s10 = sshll.u32 %s850_s19, 5 }
 0x17e   : > { %s216_s11 = scalar_lea.vmem [#allocation6], %s542_s7  ;;  %s1011_s9 = scalar_lea.hbm %s1051_s4, %s551_s10 }
 0x17f   : > { %v381_v1 = vrot.slane %v380_v63, 2  ;;  %v389_v2 = vadd.f32 %v388_v0, %v387_v62  ;;  %s432_s12 = sshll.u32 %s216_s11, 4  ;;  %s403_s13 = scalar_lea.sflag [#allocation7], %s969_s22  ;;  %s433_s12 = int_to_ptr.vmem [resolvable:$true] %s432_s12 }
 0x180   : > { %s724_s14 = scalar_lea.vmem %s433_s12, 32  ;;  %s803_s19 = smov [#allocation6]  }
 0x181   : > { %v382_v3 = vadd.f32 %v381_v1, %v380_v63  ;;  %v390_v4 = vrot.slane %v389_v2, 2  ;;  %p725_p9 = scmp.ne.s32.totalorder %s433_s12, %s724_s14  ;;  %s728_s20 = sshll.u32 %s803_s19, 4  ;;  %s729_s20 = int_to_ptr.vmem [resolvable:$false] %s728_s20 }
 0x182   : > { %s730_s23 = scalar_lea.vmem %s729_s20, 64  ;;  %p731_p12 = scmp.lt.s32.totalorder %s433_s12, %s729_s20 }
 0x183   : > { %v383_v5 = vrot.slane %v382_v3, 1  ;;  %v391_v6 = vadd.f32 %v390_v4, %v389_v2  ;;  %p726_p10 = pnand %p725_p9, %p867_p5  ;;  %p732_p13 = scmp.lt.s32.totalorder %s730_s23, %s724_s14 }
 0x185   : > { %v392_v7 = vrot.slane %v391_v6, 1  ;;  %v384_v8 = vadd.f32 %v383_v5, %v382_v3  ;;  %p727_p11 = pneg %p726_p10  ;;  %p733_p0 = por %p732_p13, %p731_p12 }
 0x187   : > { %v393_v9 = vadd.f32 %v392_v7, %v391_v6  ;;  %p734_p1 = pnand %p733_p0, %p727_p11 }
 0x189   : > { %v395_v10 = vsel %vm394_vm5, %v384_v8, %v393_v9 }
 0x18a   : > { %396 = vst [vmem:[%s216_s11] sm:$0x3] %v395_v10 }
 0x18b   : > { %737 = shalt.err (!%p734_p1)
}
 0x18c   : > { %s738_s27 = scalar_lea.hbm %s1011_s9, 32  ;;  %s742_s29 = scalar_lea.hbm %s1051_s4, 64 }
 0x18d   : > { %p739_p2 = scmp.ne.s32.totalorder %s1011_s9, %s738_s27  ;;  %p743_p7 = scmp.lt.s32.totalorder %s1011_s9, %s1051_s4 }
 0x18e   : > { %p744_p8 = scmp.lt.s32.totalorder %s742_s29, %s738_s27 }
 0x18f   : > { %p740_p3 = pnand %p739_p2, %p867_p5 }
 0x190   : > { %p745_p6 = por %p744_p8, %p743_p7 }
 0x191   : > { %p741_p4 = pneg %p740_p3 }
 0x193   : > { %p746_p9 = pnand %p745_p6, %p741_p4 }
 0x195   : > { %749 = shalt.err (!%p746_p9)
}
 0x196   : > { %615 = dma.vmem_to_hbm [thread:$0]  (%p867_p5), %s433_s12, 32, %s1011_s9, %s403_s13  }
 0x197 PF: > { %p631_p10 = scmp.ge.s32.totalorder %s792_s18, 2  ;;  %s444_s7 = sand.u32 1, %s780_s15  }
 0x198   : > { %p1055_p11 = scmp.ne.s32.totalorder %s1053_s26, 0  ;;  %s445_s10 = scalar_lea.sflag [#allocation4], %s444_s7 }
 0x19a   : > { %p623_p12 = pnand %p631_p10, %p1055_p11 }
 0x19c   : > { %p624_p13 = pneg %p623_p12 }
 0x19e   : > { %771 = dma.done.wait (%p624_p13), %s445_s10, 256  }
 0x19f   : > { %773 = vsyncadd (%p624_p13), %s445_s10, 4294967040  ;;  %s454_s11 = scalar_lea.sflag [#allocation7], %s444_s7 }
 0x1a0   : > { %775 = dma.done.wait (%p624_p13), %s454_s11, 32  }
 0x1a1   : > { %777 = vsyncadd (%p624_p13), %s454_s11, 4294967264  ;;  %p19_p5 = scmp.ge.s32.totalorder %s854_s21, 4   ;;  %s1056_s15 = smov %s784_s16 }
 0x1a2   : > { %s1057_s16 = smov %s788_s17  ;;  %s1058_s17 = smov %s865_s24 }
 0x1a3   : > { %s1059_s18 = smov %s854_s21  ;;  %21 = sbr.rel (!%p19_p5) target bundleno = 6 (0x6), region = 89 }
 0x1a8   :  { %459 = vsyncpa [#allocation3], 1 }
 0x1a9   :  { %461 = vsyncpa [#allocation3 + $0x1], 1 }
 0x1aa   :  { %462 = vsyncpa [#allocation4], 1 }
 0x1ab   :  { %464 = vsyncpa [#allocation4 + $0x1], 1 }
 0x1ac   :  { %465 = vsyncpa [#allocation7], 1 }
 0x1ad   :  { %467 = vsyncpa [#allocation7 + $0x1], 1 }

</bundles_post_ra>
